<compile_context>
chip_gen: v7x
topology: tpu7x:2x2x1
jax: 0.10.0
libtpu: 0.0.40
codegen_flags: <defaults>
</compile_context>

<pallas_src>
import functools

import jax
import jax.numpy as jnp
from jax import lax
from jax.experimental import pallas as pl
from jax.experimental.pallas import tpu as pltpu

_LN2 = 0.6931471805599453


# ---------------------------------------------------------------------------
# Hardware-aware sizing helpers
# ---------------------------------------------------------------------------
def _vmem_capacity_bytes():
    try:
        cap = getattr(pltpu.get_tpu_info(), "vmem_capacity_bytes", None)
        if cap:
            return int(cap)
    except Exception:
        pass
    return 64 * 1024 * 1024          # conservative default (v7x per-core VMEM)


def _vmem_limit_bytes():
    cap = _vmem_capacity_bytes()
    # ~48 MiB on v7x (64 MiB physical), ~96 MiB on v5e/v6e (128 MiB physical).
    return max(32 << 20, min((cap * 3) // 4, 100 << 20))


def _round_up(x, m):
    return ((x + m - 1) // m) * m


def _pick_tiles(batch, dim, mode):
    """Pick (row_block, col_block): largest multiples of 8 whose per-step live
    footprint fits a fraction of this generation's VMEM."""
    budget = _vmem_capacity_bytes() // 3
    full = _round_up(batch, 8)
    tb = min(full, 512)
    tc = min(full, 512)

    def step_bytes(tb_, tc_):
        io = 2 * (tb_ + tc_) * dim * 4                      # double-buffered inputs
        if mode == "jsd":
            return io + 3 * tb_ * tc_ * dim * 4 + 4 * tb_ * tc_ * 4
        return io + 6 * tb_ * tc_ * 4                       # bhat: only (TB,TC) temps

    while step_bytes(tb, tc) > budget and max(tb, tc) > 8:
        if tc >= tb:
            tc = max(8, _round_up(tc // 2, 8))
        else:
            tb = max(8, _round_up(tb // 2, 8))
    return tb, tc


def _pad_rows(x, rows):
    return x if x.shape[0] == rows else jnp.pad(x, ((0, rows - x.shape[0]), (0, 0)))


def _scalar_at_origin(shape, value):
    """Tile with `value` at [0,0] and zeros elsewhere (lane-dense update)."""
    r0 = lax.broadcasted_iota(jnp.int32, shape, 0) == 0
    c0 = lax.broadcasted_iota(jnp.int32, shape, 1) == 0
    return jnp.where(r0 & c0, value, 0.0)


# ---------------------------------------------------------------------------
# Prep kernels (run once per input; hoists all per-row transcendentals)
# ---------------------------------------------------------------------------
def _bhat_prep_kernel(z_ref, q_ref):
    z = z_ref[...].astype(jnp.float32)
    # F.normalize(dim=-1): x * rsqrt(max(sum(x^2), eps^2)); EUP, no VALU div.
    z = z * lax.rsqrt(jnp.maximum(jnp.sum(z * z, axis=-1, keepdims=True), 1e-24))
    # sqrt(softmax(z)) = exp(0.5*(z-m)) * rsqrt(sum(exp(z-m))), sum(exp) = sum(h*h).
    h = jnp.exp(0.5 * (z - jnp.max(z, axis=-1, keepdims=True)))
    q_ref[...] = h * lax.rsqrt(jnp.sum(h * h, axis=-1, keepdims=True))


def _jsd_prep_kernel(z_ref, p_ref, r_ref):
    z = z_ref[...].astype(jnp.float32)
    e = jnp.exp(z - jnp.max(z, axis=-1, keepdims=True))
    p = e * pl.reciprocal(jnp.sum(e, axis=-1, keepdims=True), approx=False)
    p_ref[...] = p
    # r = sum(p * log(p + eps)) per row (used closed-form in the wrapper).
    r_ref[...] = jnp.sum(p * jnp.log(p + 1e-8), axis=-1, keepdims=True)


def _bhat_prep(z, tile, vmem_limit):
    b, d = z.shape
    nblk = pl.cdiv(b, tile)
    zp = _pad_rows(z, nblk * tile)
    return pl.pallas_call(
        _bhat_prep_kernel,
        out_shape=jax.ShapeDtypeStruct((nblk * tile, d), jnp.float32),
        grid=(nblk,),
        in_specs=[pl.BlockSpec((tile, d), lambda i: (i, 0))],
        out_specs=pl.BlockSpec((tile, d), lambda i: (i, 0)),
        compiler_params=pltpu.CompilerParams(
            dimension_semantics=("parallel",),
            vmem_limit_bytes=vmem_limit),
    )(zp)


def _jsd_prep(z, tile, vmem_limit):
    b, d = z.shape
    nblk = pl.cdiv(b, tile)
    zp = _pad_rows(z, nblk * tile)
    return pl.pallas_call(
        _jsd_prep_kernel,
        out_shape=(jax.ShapeDtypeStruct((nblk * tile, d), jnp.float32),
                   jax.ShapeDtypeStruct((nblk * tile, 1), jnp.float32)),
        grid=(nblk,),
        in_specs=[pl.BlockSpec((tile, d), lambda i: (i, 0))],
        out_specs=(pl.BlockSpec((tile, d), lambda i: (i, 0)),
                   pl.BlockSpec((tile, 1), lambda i: (i, 0))),
        compiler_params=pltpu.CompilerParams(
            dimension_semantics=("parallel",),
            vmem_limit_bytes=vmem_limit),
    )(zp)


# ---------------------------------------------------------------------------
# Pairwise kernels (2-D grid: row blocks x col blocks).
# Outputs: per-row-block (8,128) lane-dense partial sums; accumulate across j.
# ---------------------------------------------------------------------------
def _bhat_pair_kernel(q1_ref, q2_ref, diag_ref, tot_ref, *,
                      row_block, col_block, batch):
    i = pl.program_id(0)
    j = pl.program_id(1)

    @pl.when(j == 0)
    def _init():
        diag_ref[...] = jnp.zeros_like(diag_ref)
        tot_ref[...] = jnp.zeros_like(tot_ref)

    # Bhattacharyya coefficients for this tile: contract both operands on the
    # feature dim (no transposed copy feeding the MXU).
    bc = lax.dot_general(q1_ref[...], q2_ref[...], (((1,), (1,)), ((), ())),
                         preferred_element_type=jnp.float32,
                         precision=lax.Precision.HIGHEST)       # (TB, TC)
    lb = jnp.log(bc + 1e-8)

    rows = lax.broadcasted_iota(jnp.int32, lb.shape, 0) + i * row_block
    cols = lax.broadcasted_iota(jnp.int32, lb.shape, 1) + j * col_block
    valid = (rows < batch) & (cols < batch)          # mask padded rows / cols
    diag = valid & (rows == cols)

    d = jnp.sum(jnp.where(diag, lb, 0.0), keepdims=True)    # (1, 1)
    t = jnp.sum(jnp.where(valid, lb, 0.0), keepdims=True)   # (1, 1)
    diag_ref[...] += _scalar_at_origin(diag_ref.shape, d)
    tot_ref[...] += _scalar_at_origin(tot_ref.shape, t)


def _jsd_pair_kernel(p1_ref, p2_ref, diag_ref, tot_ref, *,
                     row_block, col_block, batch):
    i = pl.program_id(0)
    j = pl.program_id(1)

    @pl.when(j == 0)
    def _init():
        diag_ref[...] = jnp.zeros_like(diag_ref)
        tot_ref[...] = jnp.zeros_like(tot_ref)

    p1 = p1_ref[...]                              # (TB, D)
    p2 = p2_ref[...]                              # (TC, D)

    # Only the cross term c_ij = sum_d s*log(s + 2e-8), s = p1_i + p2_j, needs
    # the 3-D tile (single transcendental). The r1/r2/ln2 parts are added
    # closed-form in the wrapper.
    s = p1[:, None, :] + p2[None, :, :]           # (TB, TC, D)
    c = jnp.sum(s * jnp.log(s + 2e-8), axis=-1)   # (TB, TC)

    rows = lax.broadcasted_iota(jnp.int32, c.shape, 0) + i * row_block
    cols = lax.broadcasted_iota(jnp.int32, c.shape, 1) + j * col_block
    valid = (rows < batch) & (cols < batch)
    diag = valid & (rows == cols)

    d = jnp.sum(jnp.where(diag, c, 0.0), keepdims=True)     # (1, 1)
    t = jnp.sum(jnp.where(valid, c, 0.0), keepdims=True)    # (1, 1)
    diag_ref[...] += _scalar_at_origin(diag_ref.shape, d)
    tot_ref[...] += _scalar_at_origin(tot_ref.shape, t)


def _pairwise_call(kernel_fn, x1, x2, batch, tb, tc, vmem_limit):
    d = x1.shape[1]
    nr = x1.shape[0] // tb
    nc = x2.shape[0] // tc
    kernel = functools.partial(kernel_fn, row_block=tb, col_block=tc, batch=batch)
    dpart, tpart = pl.pallas_call(
        kernel,
        out_shape=(jax.ShapeDtypeStruct((nr * 8, 128), jnp.float32),
                   jax.ShapeDtypeStruct((nr * 8, 128), jnp.float32)),
        grid=(nr, nc),
        in_specs=[pl.BlockSpec((tb, d), lambda i, j: (i, 0)),
                  pl.BlockSpec((tc, d), lambda i, j: (j, 0))],
        out_specs=(pl.BlockSpec((8, 128), lambda i, j: (i, 0)),
                   pl.BlockSpec((8, 128), lambda i, j: (i, 0))),
        compiler_params=pltpu.CompilerParams(
            dimension_semantics=("parallel", "arbitrary"),  # rows shard on v7x cores
            vmem_limit_bytes=vmem_limit),
    )(x1, x2)
    return jnp.sum(dpart), jnp.sum(tpart)


# ---------------------------------------------------------------------------
# Loss wrappers
# ---------------------------------------------------------------------------
def bhattacharya_cl_loss(z1, z2, lambd=1.0, tiles=None):
    B, D = z1.shape
    vmem_limit = _vmem_limit_bytes()
    tb, tc = tiles if tiles is not None else _pick_tiles(B, D, "bhat")
    q1 = _bhat_prep(z1, tb, vmem_limit)           # sqrt(softmax(normalize(z1)))
    q2 = _bhat_prep(z2, tc, vmem_limit)
    diag_sum, tot_sum = _pairwise_call(_bhat_pair_kernel, q1, q2, B, tb, tc, vmem_limit)
    pos_loss = -diag_sum / B                      # -log(pos + eps).mean()
    neg_loss = (tot_sum - diag_sum) / (B * (B - 1))   # log(neg + eps).mean()
    return pos_loss + lambd * neg_loss


def jsd_cl_loss(z1, z2, lambd=1.0, tiles=None):
    B, D = z1.shape
    vmem_limit = _vmem_limit_bytes()
    tb, tc = tiles if tiles is not None else _pick_tiles(B, D, "jsd")
    p1, r1 = _jsd_prep(z1, tb, vmem_limit)
    p2, r2 = _jsd_prep(z2, tc, vmem_limit)
    c_diag, c_tot = _pairwise_call(_jsd_pair_kernel, p1, p2, B, tb, tc, vmem_limit)

    # jsd_ij = 0.5*(r1_i + r2_j - c_ij) + ln2   (identity; sum_d p = 1)
    sum_r1 = jnp.sum(r1[:B, 0])
    sum_r2 = jnp.sum(r2[:B, 0])
    jsd_diag = 0.5 * (sum_r1 + sum_r2) + B * _LN2 - 0.5 * c_diag
    jsd_tot = 0.5 * B * (sum_r1 + sum_r2) + B * B * _LN2 - 0.5 * c_tot
    jsd_off = jsd_tot - jsd_diag

    pos_loss = jsd_diag / B                       #  diag(jsd).mean()
    neg_loss = -jsd_off / (B * (B - 1))           # -offdiag(jsd).mean()
    return pos_loss + lambd * neg_loss


def dial_loss(z1, z2, *, sim_type="bhat", lambd=1.0):
    """DiALLoss.forward: dispatch to the configured similarity loss."""
    losses = {"bhat": bhattacharya_cl_loss, "JSD": jsd_cl_loss}
    return losses[sim_type](z1, z2, lambd)


# ---------------------------------------------------------------------------
# Pure-JAX references (direct translation of the PyTorch modules)
# ---------------------------------------------------------------------------
def _bhat_ref(z1, z2, lambd=1.0):
    z1 = z1 / jnp.maximum(jnp.linalg.norm(z1, axis=-1, keepdims=True), 1e-12)
    z2 = z2 / jnp.maximum(jnp.linalg.norm(z2, axis=-1, keepdims=True), 1e-12)
    p1 = jnp.sqrt(jax.nn.softmax(z1, axis=-1))
    p2 = jnp.sqrt(jax.nn.softmax(z2, axis=-1))
    bc = jnp.matmul(p1, p2.T, precision=lax.Precision.HIGHEST)
    B = bc.shape[0]
    pos_loss = -jnp.mean(jnp.log(jnp.diagonal(bc) + 1e-8))
    mask = ~jnp.eye(B, dtype=bool)
    neg_loss = jnp.mean(jnp.log(bc[mask] + 1e-8))
    return pos_loss + lambd * neg_loss


def _jsd_ref(z1, z2, lambd=1.0):
    p1 = jax.nn.softmax(z1, axis=-1)
    p2 = jax.nn.softmax(z2, axis=-1)
    p1e = p1[:, None, :]
    p2e = p2[None, :, :]
    m = 0.5 * (p1e + p2e)
    kl1 = jnp.sum(p1e * (jnp.log(p1e + 1e-8) - jnp.log(m + 1e-8)), axis=-1)
    kl2 = jnp.sum(p2e * (jnp.log(p2e + 1e-8) - jnp.log(m + 1e-8)), axis=-1)
    jsd = 0.5 * (kl1 + kl2)
    B = jsd.shape[0]
    pos_loss = jnp.mean(jnp.diagonal(jsd))
    mask = ~jnp.eye(B, dtype=bool)
    neg_loss = -jnp.mean(jsd[mask])
    return pos_loss + lambd * neg_loss


if __name__ == "__main__":
    k1, k2, k3, k4 = jax.random.split(jax.random.PRNGKey(0), 4)

    # Default path: single-block tiles chosen by the VMEM-budget picker.
    B, D = 16, 128
    z1 = jax.random.normal(k1, (B, D), jnp.float32)
    z2 = jax.random.normal(k2, (B, D), jnp.float32)

    bhat = jax.jit(functools.partial(dial_loss, sim_type="bhat", lambd=1.0))(z1, z2)
    jsd = jax.jit(functools.partial(dial_loss, sim_type="JSD", lambd=1.0))(z1, z2)
    jax.block_until_ready((bhat, jsd))

    assert jnp.allclose(bhat, _bhat_ref(z1, z2), rtol=1e-4, atol=2e-5), (
        bhat, _bhat_ref(z1, z2))
    assert jnp.allclose(jsd, _jsd_ref(z1, z2), rtol=1e-4, atol=2e-5), (
        jsd, _jsd_ref(z1, z2))

    # Multi-block / padded path: non-tile-aligned batch with forced 8x8 tiles
    # exercises the 2-D grid, accumulation, and row/col masking.
    B2, D2 = 20, 64
    z1b = jax.random.normal(k3, (B2, D2), jnp.float32)
    z2b = jax.random.normal(k4, (B2, D2), jnp.float32)
    bhat2 = jax.jit(functools.partial(bhattacharya_cl_loss, lambd=0.5,
                                      tiles=(8, 8)))(z1b, z2b)
    jsd2 = jax.jit(functools.partial(jsd_cl_loss, lambd=0.5,
                                     tiles=(8, 8)))(z1b, z2b)
    jax.block_until_ready((bhat2, jsd2))

    assert jnp.allclose(bhat2, _bhat_ref(z1b, z2b, 0.5), rtol=1e-4, atol=2e-5), (
        bhat2, _bhat_ref(z1b, z2b, 0.5))
    assert jnp.allclose(jsd2, _jsd_ref(z1b, z2b, 0.5), rtol=1e-4, atol=2e-5), (
        jsd2, _jsd_ref(z1b, z2b, 0.5))

    print("KERNEL_OK")
</pallas_src>

<mosaic_0001>
module attributes {stable_mosaic.version = 11 : i64} {
  func.func @_bhat_prep_kernel(%arg0: i32, %arg1: memref<16x128xf32, #tpu.memory_space<vmem>>, %arg2: memref<16x128xf32, #tpu.memory_space<vmem>>) attributes {dimension_semantics = [#tpu.dimension_semantics<parallel>], iteration_bounds = array<i64: 1>, scalar_prefetch = 0 : i64, scratch_operands = 0 : i64, tpu.core_type = #tpu.core_type<tc>, window_params = [{transform_indices = @transform_0, window_bounds = array<i64: 16, 128>}, {transform_indices = @transform_1, window_bounds = array<i64: 16, 128>}]} {
    %c0 = arith.constant 0 : index
    %c0_0 = arith.constant 0 : index
    %0 = vector.load %arg1[%c0, %c0_0] : memref<16x128xf32, #tpu.memory_space<vmem>>, vector<16x128xf32>
    %1 = arith.mulf %0, %0 : vector<16x128xf32>
    %cst = arith.constant dense<0.000000e+00> : vector<16xf32>
    %2 = vector.multi_reduction <add>, %1, %cst [1] : vector<16x128xf32> to vector<16xf32>
    %3 = vector.shape_cast %2 : vector<16xf32> to vector<16x1xf32>
    %cst_1 = arith.constant 1.000000e-24 : f32
    %4 = vector.broadcast %cst_1 : f32 to vector<16x1xf32>
    %5 = arith.maximumf %3, %4 : vector<16x1xf32>
    %6 = math.rsqrt %5 : vector<16x1xf32>
    %7 = vector.broadcast %6 : vector<16x1xf32> to vector<16x128xf32>
    %8 = arith.mulf %0, %7 : vector<16x128xf32>
    %cst_2 = arith.constant dense<0xFF800000> : vector<16xf32>
    %9 = vector.multi_reduction <maximumf>, %8, %cst_2 [1] : vector<16x128xf32> to vector<16xf32>
    %10 = vector.shape_cast %9 : vector<16xf32> to vector<16x1xf32>
    %11 = vector.broadcast %10 : vector<16x1xf32> to vector<16x128xf32>
    %12 = arith.subf %8, %11 : vector<16x128xf32>
    %cst_3 = arith.constant 5.000000e-01 : f32
    %13 = vector.broadcast %cst_3 : f32 to vector<16x128xf32>
    %14 = arith.mulf %13, %12 : vector<16x128xf32>
    %15 = math.exp %14 : vector<16x128xf32>
    %16 = arith.mulf %15, %15 : vector<16x128xf32>
    %cst_4 = arith.constant dense<0.000000e+00> : vector<16xf32>
    %17 = vector.multi_reduction <add>, %16, %cst_4 [1] : vector<16x128xf32> to vector<16xf32>
    %18 = vector.shape_cast %17 : vector<16xf32> to vector<16x1xf32>
    %19 = math.rsqrt %18 : vector<16x1xf32>
    %20 = vector.broadcast %19 : vector<16x1xf32> to vector<16x128xf32>
    %21 = arith.mulf %15, %20 : vector<16x128xf32>
    %c0_5 = arith.constant 0 : index
    %c0_6 = arith.constant 0 : index
    %22 = vector.load %arg2[%c0_5, %c0_6] : memref<16x128xf32, #tpu.memory_space<vmem>>, vector<16x128xf32>
    tpu.vector_store %arg2[%c0_5, %c0_6], %21 {strides = array<i32>} : memref<16x128xf32, #tpu.memory_space<vmem>>, vector<16x128xf32>,
    return
  }
  func.func @transform_0(%arg0: i32) -> (i32, i32) {
    %c0_i32 = arith.constant 0 : i32
    %c0_i32_0 = arith.constant 0 : i32
    return %arg0, %c0_i32 : i32, i32
  }
  func.func @transform_1(%arg0: i32) -> (i32, i32) {
    %c0_i32 = arith.constant 0 : i32
    %c0_i32_0 = arith.constant 0 : i32
    return %arg0, %c0_i32 : i32, i32
  }
}

module attributes {stable_mosaic.version = 11 : i64} {
  func.func @_bhat_prep_kernel(%arg0: i32, %arg1: memref<16x128xf32, #tpu.memory_space<vmem>>, %arg2: memref<16x128xf32, #tpu.memory_space<vmem>>) attributes {dimension_semantics = [#tpu.dimension_semantics<parallel>], iteration_bounds = array<i64: 1>, scalar_prefetch = 0 : i64, scratch_operands = 0 : i64, tpu.core_type = #tpu.core_type<tc>, window_params = [{transform_indices = @transform_0, window_bounds = array<i64: 16, 128>}, {transform_indices = @transform_1, window_bounds = array<i64: 16, 128>}]} {
    %c0 = arith.constant 0 : index
    %c0_0 = arith.constant 0 : index
    %0 = vector.load %arg1[%c0, %c0_0] : memref<16x128xf32, #tpu.memory_space<vmem>>, vector<16x128xf32>
    %1 = arith.mulf %0, %0 : vector<16x128xf32>
    %cst = arith.constant dense<0.000000e+00> : vector<16xf32>
    %2 = vector.multi_reduction <add>, %1, %cst [1] : vector<16x128xf32> to vector<16xf32>
    %3 = vector.shape_cast %2 : vector<16xf32> to vector<16x1xf32>
    %cst_1 = arith.constant 1.000000e-24 : f32
    %4 = vector.broadcast %cst_1 : f32 to vector<16x1xf32>
    %5 = arith.maximumf %3, %4 : vector<16x1xf32>
    %6 = math.rsqrt %5 : vector<16x1xf32>
    %7 = vector.broadcast %6 : vector<16x1xf32> to vector<16x128xf32>
    %8 = arith.mulf %0, %7 : vector<16x128xf32>
    %cst_2 = arith.constant dense<0xFF800000> : vector<16xf32>
    %9 = vector.multi_reduction <maximumf>, %8, %cst_2 [1] : vector<16x128xf32> to vector<16xf32>
    %10 = vector.shape_cast %9 : vector<16xf32> to vector<16x1xf32>
    %11 = vector.broadcast %10 : vector<16x1xf32> to vector<16x128xf32>
    %12 = arith.subf %8, %11 : vector<16x128xf32>
    %cst_3 = arith.constant 5.000000e-01 : f32
    %13 = vector.broadcast %cst_3 : f32 to vector<16x128xf32>
    %14 = arith.mulf %13, %12 : vector<16x128xf32>
    %15 = math.exp %14 : vector<16x128xf32>
    %16 = arith.mulf %15, %15 : vector<16x128xf32>
    %cst_4 = arith.constant dense<0.000000e+00> : vector<16xf32>
    %17 = vector.multi_reduction <add>, %16, %cst_4 [1] : vector<16x128xf32> to vector<16xf32>
    %18 = vector.shape_cast %17 : vector<16xf32> to vector<16x1xf32>
    %19 = math.rsqrt %18 : vector<16x1xf32>
    %20 = vector.broadcast %19 : vector<16x1xf32> to vector<16x128xf32>
    %21 = arith.mulf %15, %20 : vector<16x128xf32>
    %c0_5 = arith.constant 0 : index
    %c0_6 = arith.constant 0 : index
    %22 = vector.load %arg2[%c0_5, %c0_6] : memref<16x128xf32, #tpu.memory_space<vmem>>, vector<16x128xf32>
    tpu.vector_store %arg2[%c0_5, %c0_6], %21 {strides = array<i32>} : memref<16x128xf32, #tpu.memory_space<vmem>>, vector<16x128xf32>,
    return
  }
  func.func @transform_0(%arg0: i32) -> (i32, i32) {
    %c0_i32 = arith.constant 0 : i32
    %c0_i32_0 = arith.constant 0 : i32
    return %arg0, %c0_i32 : i32, i32
  }
  func.func @transform_1(%arg0: i32) -> (i32, i32) {
    %c0_i32 = arith.constant 0 : i32
    %c0_i32_0 = arith.constant 0 : i32
    return %arg0, %c0_i32 : i32, i32
  }
}

module attributes {stable_mosaic.version = 11 : i64} {
  func.func @_bhat_pair_kernel(%arg0: i32, %arg1: i32, %arg2: memref<16x128xf32, #tpu.memory_space<vmem>>, %arg3: memref<16x128xf32, #tpu.memory_space<vmem>>, %arg4: memref<8x128xf32, #tpu.memory_space<vmem>>, %arg5: memref<8x128xf32, #tpu.memory_space<vmem>>) attributes {dimension_semantics = [#tpu.dimension_semantics<parallel>, #tpu.dimension_semantics<arbitrary>], iteration_bounds = array<i64: 1, 1>, scalar_prefetch = 0 : i64, scratch_operands = 0 : i64, tpu.core_type = #tpu.core_type<tc>, window_params = [{transform_indices = @transform_0, window_bounds = array<i64: 16, 128>}, {transform_indices = @transform_1, window_bounds = array<i64: 16, 128>}, {transform_indices = @transform_2, window_bounds = array<i64: 8, 128>}, {transform_indices = @transform_3, window_bounds = array<i64: 8, 128>}]} {
    %c0_i32 = arith.constant 0 : i32
    %0 = arith.cmpi eq, %arg1, %c0_i32 : i32
    %1 = arith.extui %0 : i1 to i32
    %c0_i32_0 = arith.constant 0 : i32
    %2 = arith.cmpi ne, %1, %c0_i32_0 : i32
    scf.if %2 {
      %cst_26 = arith.constant 0.000000e+00 : f32
      %66 = vector.broadcast %cst_26 : f32 to vector<8x128xf32>
      %c0_27 = arith.constant 0 : index
      %c0_28 = arith.constant 0 : index
      %67 = vector.load %arg4[%c0_27, %c0_28] : memref<8x128xf32, #tpu.memory_space<vmem>>, vector<8x128xf32>
      tpu.vector_store %arg4[%c0_27, %c0_28], %66 {strides = array<i32>} : memref<8x128xf32, #tpu.memory_space<vmem>>, vector<8x128xf32>,
      %cst_29 = arith.constant 0.000000e+00 : f32
      %68 = vector.broadcast %cst_29 : f32 to vector<8x128xf32>
      %c0_30 = arith.constant 0 : index
      %c0_31 = arith.constant 0 : index
      %69 = vector.load %arg5[%c0_30, %c0_31] : memref<8x128xf32, #tpu.memory_space<vmem>>, vector<8x128xf32>
      tpu.vector_store %arg5[%c0_30, %c0_31], %68 {strides = array<i32>} : memref<8x128xf32, #tpu.memory_space<vmem>>, vector<8x128xf32>,
    } else {
    }
    %c0 = arith.constant 0 : index
    %c0_1 = arith.constant 0 : index
    %3 = vector.load %arg2[%c0, %c0_1] : memref<16x128xf32, #tpu.memory_space<vmem>>, vector<16x128xf32>
    %c0_2 = arith.constant 0 : index
    %c0_3 = arith.constant 0 : index
    %4 = vector.load %arg3[%c0_2, %c0_3] : memref<16x128xf32, #tpu.memory_space<vmem>>, vector<16x128xf32>
    %cst = arith.constant dense<0.000000e+00> : vector<16x16xf32>
    %5 = tpu.matmul %3, %4, %cst {dimension_numbers = #tpu.dot_dimension_numbers<[1], [1], [0], [0], [0, 0, 1, 0], [], []>, precision = #tpu.contract_precision<fp32>} : vector<16x128xf32>, vector<16x128xf32>, vector<16x16xf32> -> vector<16x16xf32>
    %cst_4 = arith.constant 9.99999993E-9 : f32
    %6 = vector.broadcast %cst_4 : f32 to vector<16x16xf32>
    %7 = arith.addf %5, %6 : vector<16x16xf32>
    %8 = math.log %7 : vector<16x16xf32>
    %9 = tpu.iota {dimensions = array<i32: 0>} : vector<16x16xi32>
    %c16_i32 = arith.constant 16 : i32
    %10 = arith.muli %arg0, %c16_i32 : i32
    %11 = vector.broadcast %10 : i32 to vector<16x16xi32>
    %12 = arith.addi %9, %11 : vector<16x16xi32>
    %13 = tpu.iota {dimensions = array<i32: 1>} : vector<16x16xi32>
    %c16_i32_5 = arith.constant 16 : i32
    %14 = arith.muli %arg1, %c16_i32_5 : i32
    %15 = vector.broadcast %14 : i32 to vector<16x16xi32>
    %16 = arith.addi %13, %15 : vector<16x16xi32>
    %c16_i32_6 = arith.constant 16 : i32
    %17 = vector.broadcast %c16_i32_6 : i32 to vector<16x16xi32>
    %18 = arith.cmpi slt, %12, %17 : vector<16x16xi32>
    %c16_i32_7 = arith.constant 16 : i32
    %19 = vector.broadcast %c16_i32_7 : i32 to vector<16x16xi32>
    %20 = arith.cmpi slt, %16, %19 : vector<16x16xi32>
    %21 = arith.andi %18, %20 : vector<16x16xi1>
    %22 = arith.cmpi eq, %12, %16 : vector<16x16xi32>
    %23 = arith.andi %21, %22 : vector<16x16xi1>
    %cst_8 = arith.constant 0.000000e+00 : f32
    %24 = vector.broadcast %cst_8 : f32 to vector<16x16xf32>
    %25 = arith.select %23, %8, %24 : vector<16x16xi1>, vector<16x16xf32>
    %26 = vector.shape_cast %25 : vector<16x16xf32> to vector<1x16x16xf32>
    %cst_9 = arith.constant dense<0.000000e+00> : vector<1xf32>
    %27 = vector.multi_reduction <add>, %26, %cst_9 [1, 2] : vector<1x16x16xf32> to vector<1xf32>
    %28 = vector.shape_cast %27 : vector<1xf32> to vector<1x1x1xf32>
    %29 = vector.extract %28[0, 0, 0] : f32 from vector<1x1x1xf32>
    %30 = vector.broadcast %29 : f32 to vector<1x1xf32>
    %cst_10 = arith.constant 0.000000e+00 : f32
    %31 = vector.broadcast %cst_10 : f32 to vector<16x16xf32>
    %32 = arith.select %21, %8, %31 : vector<16x16xi1>, vector<16x16xf32>
    %33 = vector.shape_cast %32 : vector<16x16xf32> to vector<1x16x16xf32>
    %cst_11 = arith.constant dense<0.000000e+00> : vector<1xf32>
    %34 = vector.multi_reduction <add>, %33, %cst_11 [1, 2] : vector<1x16x16xf32> to vector<1xf32>
    %35 = vector.shape_cast %34 : vector<1xf32> to vector<1x1x1xf32>
    %36 = vector.extract %35[0, 0, 0] : f32 from vector<1x1x1xf32>
    %37 = vector.broadcast %36 : f32 to vector<1x1xf32>
    %c0_12 = arith.constant 0 : index
    %c0_13 = arith.constant 0 : index
    %38 = vector.load %arg4[%c0_12, %c0_13] : memref<8x128xf32, #tpu.memory_space<vmem>>, vector<8x128xf32>
    %39 = tpu.iota {dimensions = array<i32: 0>} : vector<8x128xi32>
    %c0_i32_14 = arith.constant 0 : i32
    %40 = vector.broadcast %c0_i32_14 : i32 to vector<8x128xi32>
    %41 = arith.cmpi eq, %39, %40 : vector<8x128xi32>
    %42 = tpu.iota {dimensions = array<i32: 1>} : vector<8x128xi32>
    %c0_i32_15 = arith.constant 0 : i32
    %43 = vector.broadcast %c0_i32_15 : i32 to vector<8x128xi32>
    %44 = arith.cmpi eq, %42, %43 : vector<8x128xi32>
    %45 = arith.andi %41, %44 : vector<8x128xi1>
    %cst_16 = arith.constant 0.000000e+00 : f32
    %46 = vector.shape_cast %30 : vector<1x1xf32> to vector<1x1xf32>
    %47 = vector.broadcast %46 : vector<1x1xf32> to vector<8x128xf32>
    %48 = vector.broadcast %cst_16 : f32 to vector<8x128xf32>
    %49 = arith.select %45, %47, %48 : vector<8x128xi1>, vector<8x128xf32>
    %50 = arith.addf %38, %49 : vector<8x128xf32>
    %c0_17 = arith.constant 0 : index
    %c0_18 = arith.constant 0 : index
    %51 = vector.load %arg4[%c0_17, %c0_18] : memref<8x128xf32, #tpu.memory_space<vmem>>, vector<8x128xf32>
    tpu.vector_store %arg4[%c0_17, %c0_18], %50 {strides = array<i32>} : memref<8x128xf32, #tpu.memory_space<vmem>>, vector<8x128xf32>,
    %c0_19 = arith.constant 0 : index
    %c0_20 = arith.constant 0 : index
    %52 = vector.load %arg5[%c0_19, %c0_20] : memref<8x128xf32, #tpu.memory_space<vmem>>, vector<8x128xf32>
    %53 = tpu.iota {dimensions = array<i32: 0>} : vector<8x128xi32>
    %c0_i32_21 = arith.constant 0 : i32
    %54 = vector.broadcast %c0_i32_21 : i32 to vector<8x128xi32>
    %55 = arith.cmpi eq, %53, %54 : vector<8x128xi32>
    %56 = tpu.iota {dimensions = array<i32: 1>} : vector<8x128xi32>
    %c0_i32_22 = arith.constant 0 : i32
    %57 = vector.broadcast %c0_i32_22 : i32 to vector<8x128xi32>
    %58 = arith.cmpi eq, %56, %57 : vector<8x128xi32>
    %59 = arith.andi %55, %58 : vector<8x128xi1>
    %cst_23 = arith.constant 0.000000e+00 : f32
    %60 = vector.shape_cast %37 : vector<1x1xf32> to vector<1x1xf32>
    %61 = vector.broadcast %60 : vector<1x1xf32> to vector<8x128xf32>
    %62 = vector.broadcast %cst_23 : f32 to vector<8x128xf32>
    %63 = arith.select %59, %61, %62 : vector<8x128xi1>, vector<8x128xf32>
    %64 = arith.addf %52, %63 : vector<8x128xf32>
    %c0_24 = arith.constant 0 : index
    %c0_25 = arith.constant 0 : index
    %65 = vector.load %arg5[%c0_24, %c0_25] : memref<8x128xf32, #tpu.memory_space<vmem>>, vector<8x128xf32>
    tpu.vector_store %arg5[%c0_24, %c0_25], %64 {strides = array<i32>} : memref<8x128xf32, #tpu.memory_space<vmem>>, vector<8x128xf32>,
    return
  }
  func.func @transform_0(%arg0: i32, %arg1: i32) -> (i32, i32) {
    %c0_i32 = arith.constant 0 : i32
    %c0_i32_0 = arith.constant 0 : i32
    return %arg0, %c0_i32 : i32, i32
  }
  func.func @transform_1(%arg0: i32, %arg1: i32) -> (i32, i32) {
    %c0_i32 = arith.constant 0 : i32
    %c0_i32_0 = arith.constant 0 : i32
    return %arg1, %c0_i32 : i32, i32
  }
  func.func @transform_2(%arg0: i32, %arg1: i32) -> (i32, i32) {
    %c0_i32 = arith.constant 0 : i32
    %c0_i32_0 = arith.constant 0 : i32
    return %arg0, %c0_i32 : i32, i32
  }
  func.func @transform_3(%arg0: i32, %arg1: i32) -> (i32, i32) {
    %c0_i32 = arith.constant 0 : i32
    %c0_i32_0 = arith.constant 0 : i32
    return %arg0, %c0_i32 : i32, i32
  }
}

</mosaic_0001>

<bundles_post_ra>
// kernel: dial_loss.4
= control target key start
LH: loop header
LB: loop body
LE: loop exit
PB: predicated region body
PF: predicated region fallthrough
CT: control target
= control target key end

     0   :  { %s84_s0 = inlined_call_operand.vmem [shape: f32[16,128], index: 0, kind: input, shape index: {}]   ;;  %s85_s1 = inlined_call_operand.vmem [shape: f32[16,128], index: 1, kind: output, shape index: {}]  }
   0x1   :  { %v8_v0 = vld [vmem:[%s84_s0] sm:$0xff]  ;;  %v9_v1 = vld [vmem:[%s84_s0 + $0x8] sm:$0xff] }
   0x2   :  { %v10_v2 = vmul.f32 %v8_v0, %v8_v0  ;;  %v11_v3 = vmul.f32 %v9_v1, %v9_v1 }
   0x4   :  { %12 = vadd.xlane.f32.xlu0 %v10_v2 }
   0x8   :  { %14 = vadd.xlane.f32.xlu0 %v11_v3 }
  0x91   :  { %v13_v4 = vpop.xlane.xlu0 %12 }
  0x92   :  { %v16_v5 = vmax.f32 %v13_v4, 1e-24 }
  0x94   :  { %50 = vrsqrt.f32 %v16_v5 }
  0x95   :  { %v15_v6 = vpop.xlane.xlu0 %14 }
  0x96   :  { %v17_v7 = vmax.f32 %v15_v6, 1e-24 }
  0x98   :  { %52 = vrsqrt.f32 %v17_v7 }
  0x9e   :  { %v51_v8 = vpop.eup %50 }
  0x9f   :  { %v20_v9 = vmul.f32 %v51_v8, %v8_v0 }
  0xa1   :  { %22 = vmax.xlane.f32.xlu1 %v20_v9 }
  0xa2   :  { %v53_v10 = vpop.eup %52 }
  0xa3   :  { %v21_v11 = vmul.f32 %v53_v10, %v9_v1 }
  0xa5   :  { %24 = vmax.xlane.f32.xlu1 %v21_v11 }
 0x12e   :  { %v23_v12 = vpop.xlane.xlu1 %22 }
 0x12f   :  { %v26_v13 = vsub.f32 %v20_v9, %v23_v12 }
 0x131   :  { %v28_v14 = vmul.f32 0.5, %v26_v13 }
 0x132   :  { %v25_v15 = vpop.xlane.xlu1 %24 }
 0x133   :  { %v30_v16 = vmul.f32 1.442695, %v28_v14  ;;  %v27_v17 = vsub.f32 %v21_v11, %v25_v15 }
 0x135   :  { %54 = vpow2.f32 %v30_v16  ;;  %v29_v18 = vmul.f32 0.5, %v27_v17 }
 0x137   :  { %v32_v19 = vmul.f32 1.442695, %v29_v18 }
 0x139   :  { %56 = vpow2.f32 %v32_v19 }
 0x13f   :  { %v55_v20 = vpop.eup %54 }
 0x140   :  { %v34_v21 = vmul.f32 %v55_v20, %v55_v20 }
 0x142   :  { %36 = vadd.xlane.f32.xlu0 %v34_v21 }
 0x143   :  { %v57_v22 = vpop.eup %56 }
 0x144   :  { %v35_v23 = vmul.f32 %v57_v22, %v57_v22 }
 0x146   :  { %38 = vadd.xlane.f32.xlu1 %v35_v23 }
 0x1cf   :  { %v37_v24 = vpop.xlane.xlu0 %36 }
 0x1d0   :  { %58 = vrsqrt.f32 %v37_v24 }
 0x1d3   :  { %v39_v25 = vpop.xlane.xlu1 %38 }
 0x1d4   :  { %60 = vrsqrt.f32 %v39_v25 }
 0x1da   :  { %v59_v26 = vpop.eup %58 }
 0x1db   :  { %v42_v27 = vmul.f32 %v59_v26, %v55_v20 }
 0x1dd   :  { %44 = vst [vmem:[%s85_s1] sm:$0xff] %v42_v27 }
 0x1de   :  { %v61_v28 = vpop.eup %60 }
 0x1df   :  { %v43_v29 = vmul.f32 %v61_v28, %v57_v22 }
 0x1e1   :  { %45 = vst [vmem:[%s85_s1 + $0x8] sm:$0xff] %v43_v29 }

// kernel: dial_loss.3
= control target key start
LH: loop header
LB: loop body
LE: loop exit
PB: predicated region body
PF: predicated region fallthrough
CT: control target
= control target key end

     0   :  { %6 = vsyncpa [#allocation3], 0  ;;  %s104_s6 = smov [#allocation2]   ;;  %s135_s0 = inlined_call_operand.hbm [shape: f32[16,128], index: 0, kind: input, shape index: {}]   ;;  %s136_s1 = inlined_call_operand.vmem [shape: f32[16,128], index: 1, kind: output, shape index: {}]  }
   0x1   :  { %s12_s7 = sshll.u32 %s104_s6, 4  ;;  %s80_s10 = scalar_lea.hbm %s135_s0, 256  ;;  %s13_s7 = int_to_ptr.vmem [resolvable:$true] %s12_s7 }
   0x2   :  { %p81_p0 = scmp.ne.s32.totalorder %s135_s0, %s80_s10  ;;  %p84_p1 = scmp.lt.u32.totalorder %s80_s10, %s135_s0 }
   0x4   :  { %p86_p2 = pnand %p84_p1, %p81_p0 }
   0x6   :  { %89 = shalt.err (!%p86_p2)
}
   0x7   :  { %s90_s15 = scalar_lea.vmem %s13_s7, 256  ;;  %p95_p4 = scmp.lt.s32.totalorder %s13_s7, %s13_s7 }
   0x8   :  { %p91_p3 = scmp.ne.s32.totalorder %s13_s7, %s90_s15  ;;  %p96_p5 = scmp.lt.s32.totalorder %s90_s15, %s90_s15 }
   0xa   :  { %p97_p6 = por %p96_p5, %p95_p4 }
   0xc   :  { %p98_p7 = pnand %p97_p6, %p91_p3 }
   0xe   :  { %101 = shalt.err (!%p98_p7)
}
   0xf   :  { %s105_s16 = smov 128   ;;  %s106_s17 = smov 8  }
  0x10   :  { %18 = dma.hbm_to_vmem [thread:$0]  %s135_s0, 256, %s13_s7, [#allocation3], %s105_s16, %s105_s16, %s106_s17  }
  0x11   :  { %102 = dma.done.wait [#allocation3], 256  }
  0x12   :  { %103 = vsyncadd [#allocation3], 4294967040  ;;  %v22_v0 = vld [vmem:[#allocation2] sm:$0xff]  ;;  %v23_v1 = vld [vmem:[#allocation2 + $0x8] sm:$0xff] }
  0x13   :  { %v24_v2 = vmul.f32 %v22_v0, %v22_v0  ;;  %v25_v3 = vmul.f32 %v23_v1, %v23_v1 }
  0x15   :  { %26 = vadd.xlane.f32.xlu0 %v24_v2 }
  0x19   :  { %28 = vadd.xlane.f32.xlu0 %v25_v3 }
  0xa2   :  { %v27_v4 = vpop.xlane.xlu0 %26 }
  0xa3   :  { %v30_v5 = vmax.f32 %v27_v4, 1e-24 }
  0xa5   :  { %68 = vrsqrt.f32 %v30_v5 }
  0xa6   :  { %v29_v6 = vpop.xlane.xlu0 %28 }
  0xa7   :  { %v31_v7 = vmax.f32 %v29_v6, 1e-24 }
  0xa9   :  { %70 = vrsqrt.f32 %v31_v7 }
  0xaf   :  { %v69_v8 = vpop.eup %68 }
  0xb0   :  { %v34_v9 = vmul.f32 %v69_v8, %v22_v0 }
  0xb2   :  { %36 = vmax.xlane.f32.xlu1 %v34_v9 }
  0xb3   :  { %v71_v10 = vpop.eup %70 }
  0xb4   :  { %v35_v11 = vmul.f32 %v71_v10, %v23_v1 }
  0xb6   :  { %38 = vmax.xlane.f32.xlu1 %v35_v11 }
 0x13f   :  { %v37_v12 = vpop.xlane.xlu1 %36 }
 0x140   :  { %v40_v13 = vsub.f32 %v34_v9, %v37_v12 }
 0x142   :  { %v42_v14 = vmul.f32 0.5, %v40_v13 }
 0x143   :  { %v39_v15 = vpop.xlane.xlu1 %38 }
 0x144   :  { %v44_v16 = vmul.f32 1.442695, %v42_v14  ;;  %v41_v17 = vsub.f32 %v35_v11, %v39_v15 }
 0x146   :  { %72 = vpow2.f32 %v44_v16  ;;  %v43_v18 = vmul.f32 0.5, %v41_v17 }
 0x148   :  { %v46_v19 = vmul.f32 1.442695, %v43_v18 }
 0x14a   :  { %74 = vpow2.f32 %v46_v19 }
 0x150   :  { %v73_v20 = vpop.eup %72 }
 0x151   :  { %v48_v21 = vmul.f32 %v73_v20, %v73_v20 }
 0x153   :  { %50 = vadd.xlane.f32.xlu0 %v48_v21 }
 0x154   :  { %v75_v22 = vpop.eup %74 }
 0x155   :  { %v49_v23 = vmul.f32 %v75_v22, %v75_v22 }
 0x157   :  { %52 = vadd.xlane.f32.xlu1 %v49_v23 }
 0x1e0   :  { %v51_v24 = vpop.xlane.xlu0 %50 }
 0x1e1   :  { %76 = vrsqrt.f32 %v51_v24 }
 0x1e4   :  { %v53_v25 = vpop.xlane.xlu1 %52 }
 0x1e5   :  { %78 = vrsqrt.f32 %v53_v25 }
 0x1eb   :  { %v77_v26 = vpop.eup %76 }
 0x1ec   :  { %v56_v27 = vmul.f32 %v77_v26, %v73_v20 }
 0x1ee   :  { %58 = vst [vmem:[%s136_s1] sm:$0xff] %v56_v27 }
 0x1ef   :  { %v79_v28 = vpop.eup %78 }
 0x1f0   :  { %v57_v29 = vmul.f32 %v79_v28, %v75_v22 }
 0x1f2   :  { %59 = vst [vmem:[%s136_s1 + $0x8] sm:$0xff] %v57_v29 }
 0x1f3   :  { %64 = vsyncpa [#allocation3], 1 }

// kernel: dial_loss.5
= control target key start
LH: loop header
LB: loop body
LE: loop exit
PB: predicated region body
PF: predicated region fallthrough
CT: control target
= control target key end

     0   :  { %v529_v29 = vlaneseq  ;;  %vm552_vm5 = vcmask 130048   ;;  %s749_s1 = inlined_call_operand.vmem [shape: f32[16,128], index: 1, kind: input, shape index: {}]   ;;  %s750_s0 = inlined_call_operand.vmem [shape: f32[16,128], index: 0, kind: input, shape index: {}]   ;;  %s751_s2 = inlined_call_operand.vmem [shape: f32[8,128], index: 2, kind: output, shape index: {0}]   ;;  %s752_s3 = inlined_call_operand.vmem [shape: f32[8,128], index: 3, kind: output, shape index: {1}]  }
   0x1   :  { %v21_v0 = vld [vmem:[%s749_s1] sm:$0xff]  ;;  %v22_v1 = vld [vmem:[%s749_s1 + $0x8] sm:$0xff] }
   0x2   :  { %v19_v2 = vld [vmem:[%s750_s0] sm:$0xff]  ;;  %v24_v3 = vand.u32 4294901760, %v21_v0  ;;  %v27_v4 = vand.u32 4294901760, %v22_v1  ;;  %v20_v5 = vld [vmem:[%s750_s0 + $0x8] sm:$0xff]  ;;  %v530_v37 = vshrl.u32 %v529_v29, 7  ;;  %v537_v39 = vand.u32 127, %v529_v29 }
   0x3   :  { %v90_v6 = vand.u32 4294901760, %v19_v2  ;;  %v100_v7 = vand.u32 4294901760, %v20_v5 }
   0x4   :  { %v666_v8 = vpack.c.bf16 %v27_v4, %v24_v3  ;;  %v112_v10 = vsub.f32 %v21_v0, %v24_v3  ;;  %v119_v11 = vsub.f32 %v22_v1, %v27_v4  ;;  %v531_v38 = vadd.s32 8, %v530_v37 }
   0x5   :  { %v91_v9 = vsub.f32 %v19_v2, %v90_v6  ;;  %v101_v12 = vsub.f32 %v20_v5, %v100_v7  ;;  %vm543_vm0 = vcmp.lt.s32.totalorder %v537_v39, 16  ;;  %vm546_vm2 = vcmp.eq.s32.totalorder %v530_v37, %v537_v39 }
   0x6   :  { %667 = vmatprep.subr.bf16.mxu1 %v666_v8  ;;  %679 = vmatprep.subr.bf16.mxu0 %v666_v8  ;;  %v113_v14 = vand.u32 4294901760, %v112_v10  ;;  %v120_v15 = vand.u32 4294901760, %v119_v11  ;;  %v674_v27 = vpack.c.bf16 %v119_v11, %v112_v10  ;;  %vm547_vm1 = vcmp.eq.s32.totalorder %v531_v38, %v537_v39  ;;  %vm548_vm4 = vmand %vm543_vm0, %vm546_vm2 }
   0x7   :  { %v92_v13 = vand.u32 4294901760, %v91_v9  ;;  %669 = vmatpush3.bf16.xpose.msra.mxu1 %v666_v8  ;;  %681 = vmatpush3.bf16.xpose.msra.mxu0 %v666_v8  ;;  %v102_v16 = vand.u32 4294901760, %v101_v12  ;;  %vm549_vm3 = vmand %vm543_vm0, %vm547_vm1  ;;  %vm580_vm6 = vcmp.eq.s32.totalorder %v530_v37, 0  ;;  %vm581_vm7 = vcmp.eq.s32.totalorder %v537_v39, 0 }
   0x8   :  { %v114_v18 = vsub.f32 %v112_v10, %v113_v14  ;;  %v121_v19 = vsub.f32 %v119_v11, %v120_v15  ;;  %v682_v20 = vpack.c.bf16 %v120_v15, %v113_v14  ;;  %vm582_vm8 = vmand %vm580_vm6, %vm581_vm7 }
   0x9   :  { %v93_v17 = vsub.f32 %v91_v9, %v92_v13  ;;  %649 = vmatprep.mubr.f32.mxu0 %v92_v13  ;;  %v103_v21 = vsub.f32 %v101_v12, %v102_v16 }
   0xa   :  { %v115_v23 = vand.u32 4294901760, %v114_v18  ;;  %v122_v24 = vand.u32 4294901760, %v121_v19  ;;  %683 = vmatprep.subr.bf16.mxu0 %v682_v20 }
   0xb   :  { %v94_v22 = vand.u32 4294901760, %v93_v17  ;;  %v104_v25 = vand.u32 4294901760, %v103_v21 }
   0xc   :  { %v670_v26 = vpack.c.bf16 %v122_v24, %v115_v23 }
   0xd   :  { %628 = vmatprep.mubr.f32.mxu1 %v94_v22 }
   0xe   :  { %629 = vmatmul.mubr.f32.vlgmr.msra.gmra.mrb[0].mxu1 %v104_v25  ;;  %671 = vmatprep.subr.bf16.mxu1 %v670_v26 }
   0xf   :  { %650 = vmatmul.mubr.f32.vlgmr.msra.gmra.mrb[0].mxu0 %v102_v16  ;;  %673 = vmatpush3.bf16.xpose.msra.mxu1 %v670_v26 }
  0x10   :  { %685 = vmatpush3.bf16.xpose.msra.mxu0 %v682_v20  ;;  %635 = vmatprep.mubr.f32.mxu1 %v90_v6 }
  0x11   :  { %656 = vmatprep.mubr.f32.mxu0 %v90_v6  ;;  %675 = vmatprep.subr.bf16.mxu1 %v674_v27 }
  0x12   :  { %687 = vmatprep.subr.bf16.mxu0 %v666_v8 }
  0x16   :  { %636 = vmatmul.mubr.f32.vlgmr.msra.gmra.mrb[0].mxu1 %v100_v7 }
  0x17   :  { %657 = vmatmul.mubr.f32.vlgmr.msra.gmra.mrb[0].mxu0 %v100_v7  ;;  %677 = vmatpush3.bf16.xpose.msra.mxu1 %v674_v27 }
  0x18   :  { %689 = vmatpush3.bf16.xpose.msra.mxu0 %v666_v8  ;;  %642 = vmatprep.mubr.f32.mxu1 %v91_v9 }
  0x19   :  { %663 = vmatprep.mubr.f32.mxu0 %v90_v6 }
  0x1e   :  { %643 = vmatmul.mubr.f32.vlgmr.msra.gmra.mrb[0].mxu1 %v101_v12 }
  0x1f   :  { %664 = vmatmul.mubr.f32.vlgmr.msra.gmra.mrb[0].mxu0 %v100_v7 }
  0xf1   :  { %v644_v28 = vpop.f32.mrb[0].mxu1 }
  0xf2   :  { %v690_v30 = vadd.f32 1e-08, %v644_v28  ;;  %v665_v31 = vpop.f32.mrb[0].mxu0  ;;  %v269_v32 = vpop.f32.mrb[1].mxu1 }
  0xf3   :  { %v692_v33 = vadd.f32 1e-08, %v269_v32  ;;  %v515_v34 = vpop.f32.mrb[1].mxu0 }
  0xf4   :  { %v691_v35 = vadd.f32 %v690_v30, %v665_v31 }
  0xf5   :  { %v693_v36 = vadd.f32 %v692_v33, %v515_v34 }
  0xf6   :  { %707 = vlog2.f32 %v691_v35 }
  0xf7   :  { %709 = vlog2.f32 %v693_v36 }
 0x100   :  { %v708_v40 = vpop.eup %707 }
 0x101   :  { %v710_v41 = vpop.eup %709  ;;  %v528_v42 = vmul.f32 0.6931472, %v708_v40 }
 0x102   :  { %v526_v43 = vmul.f32 0.6931472, %v710_v41 }
 0x103   :  { %v551_v44 = vsel %vm549_vm3, %v528_v42, 0.0  ;;  %v566_v45 = vsel %vm543_vm0, %v528_v42, 0.0 }
 0x104   :  { %v550_v46 = vsel %vm548_vm4, %v526_v43, 0.0  ;;  %v554_v47 = vsel %vm552_vm5, %v551_v44, 0.0  ;;  %v565_v48 = vsel %vm543_vm0, %v526_v43, 0.0  ;;  %v568_v49 = vsel %vm552_vm5, %v566_v45, 0.0 }
 0x105   :  { %v553_v50 = vsel %vm552_vm5, %v550_v46, 0.0  ;;  %v567_v51 = vsel %vm552_vm5, %v565_v48, 0.0 }
 0x106   :  { %v555_v52 = vadd.f32 %v554_v47, %v553_v50  ;;  %v569_v53 = vadd.f32 %v568_v49, %v567_v51 }
 0x108   :  { %556 = vadd.xlane.f32.xlu0 %v555_v52 }
 0x10c   :  { %570 = vadd.xlane.f32.xlu0 %v569_v53 }
 0x195   :  { %v557_v54 = vpop.xlane.xlu0 %556 }
 0x196   :  { %v558_v55 = vrot.slane %v557_v54, 4 }
 0x198   :  { %v559_v56 = vadd.f32 %v558_v55, %v557_v54 }
 0x199   :  { %v571_v57 = vpop.xlane.xlu0 %570 }
 0x19a   :  { %v560_v58 = vrot.slane %v559_v56, 2  ;;  %v572_v59 = vrot.slane %v571_v57, 4 }
 0x19c   :  { %v573_v60 = vadd.f32 %v572_v59, %v571_v57  ;;  %v561_v61 = vadd.f32 %v560_v58, %v559_v56 }
 0x19e   :  { %v574_v62 = vrot.slane %v573_v60, 2  ;;  %v562_v63 = vrot.slane %v561_v61, 1 }
 0x1a0   :  { %v575_v0 = vadd.f32 %v574_v62, %v573_v60  ;;  %v563_v1 = vadd.f32 %v562_v63, %v561_v61 }
 0x1a2   :  { %702 = vpush %v563_v1  ;;  %v576_v2 = vrot.slane %v575_v0, 1 }
 0x1a4   :  { %v577_v3 = vadd.f32 %v576_v2, %v575_v0 }
 0x1a6   :  { %704 = vpush %v577_v3 }
 0x1d3   :  { %s703_s0 = spop %702 }
 0x1d4   :  { %v583_v4 = vstv %s703_s0 }
 0x1d5   :  { %v584_v5 = vsel %vm582_vm8, %v583_v4, 0.0 }
 0x1d6   :  { %586 = vst [vmem:[%s751_s2] sm:$0xff] %v584_v5 }
 0x1d7   :  { %s705_s1 = spop %704 }
 0x1d8   :  { %v588_v6 = vstv %s705_s1 }
 0x1d9   :  { %v589_v7 = vsel %vm582_vm8, %v588_v6, 0.0 }
 0x1da   :  { %591 = vst [vmem:[%s752_s3] sm:$0xff] %v589_v7 }

</bundles_post_ra>
